<compile_context>
chip_gen: v6e
topology: v6e:2x2x1
jax: 0.10.0
libtpu: 0.0.40
codegen_flags: <defaults>
</compile_context>

<pallas_src>
import jax
import jax.numpy as jnp
from jax.experimental import pallas as pl
from jax.experimental.pallas import tpu as pltpu


def _round_up(x, m):
    return (x + m - 1) // m * m


def _vmem_limit_bytes():
    """Generation-gated VMEM budget (<=48 MiB on v7x, ~96 MiB on v5e/v6e)."""
    cap = 64 * 1024 * 1024
    try:
        info = pltpu.get_tpu_info()
        cap = int(getattr(info, "vmem_capacity_bytes", cap))
    except Exception:
        pass  # conservative fallback (safe on every generation)
    return int(min(max(cap * 3 // 4, 32 * 1024 * 1024), 100 * 1024 * 1024))


def _pick_lane_tile(s_pad, bytes_per_col, budget, max_lane_tile=None):
    """Largest divisor of s_pad that is a multiple of 128 and fits `budget`."""
    assert s_pad % 128 == 0
    cap_cols = max(128, budget // max(int(bytes_per_col), 1))
    if max_lane_tile is not None:
        cap_cols = min(cap_cols, max(128, int(max_lane_tile)))
    units = s_pad // 128
    for u in range(min(units, cap_cols // 128), 0, -1):
        if units % u == 0:
            return u * 128
    return 128


# ----------------------------------------------------------------------------
# Kernel 1: conv as a single MXU matmul per tile + fused partial BN statistics.
#   w_ref    : (C_mm, K_pad)  bf16   weights, rows = out-channels
#   p_ref    : (K_pad, TM)    bf16   im2col patches (channel-major, lane-dense)
#   y_ref    : (C_mm, TM)     bf16   conv output, already channel-major
#   psum_ref : (C_mm, 1)      f32    sum_s  y[c, s]   over this tile
#   psq_ref  : (C_mm, 1)      f32    sum_s  y[c, s]^2 over this tile
# ----------------------------------------------------------------------------
def _conv_stats_kernel(w_ref, p_ref, y_ref, psum_ref, psq_ref):
    acc = jnp.dot(w_ref[...], p_ref[...], preferred_element_type=jnp.float32)
    y_ref[...] = acc.astype(y_ref.dtype)
    psum_ref[...] = jnp.sum(acc, axis=1, keepdims=True)
    psq_ref[...] = jnp.sum(acc * acc, axis=1, keepdims=True)


# ----------------------------------------------------------------------------
# Kernel 2: normalize + ReLU, writing the final NCDHW-layout output directly.
# TODO(synk): only the act == 'relu' branch of LUConv is wired ('prelu'/'elu' not).
# ----------------------------------------------------------------------------
def _bn_relu_kernel(y_ref, scale_ref, shift_ref, o_ref):
    y = y_ref[...].astype(jnp.float32)
    r = jnp.maximum(y * scale_ref[...] + shift_ref[...], 0.0)
    o_ref[...] = r[: o_ref.shape[0]].astype(o_ref.dtype)   # drop padded channels


def lu_conv_forward(x_ncdhw, conv_w, conv_b, bn_gamma, bn_beta, eps=1e-5,
                    *, max_lane_tile=None):
    """LUConv forward (act='relu'). x: (N,Cin,D,H,W); conv_w: (Cout,Cin,3,3,3)."""
    # A per-channel bias added before batch-statistics BatchNorm cancels exactly
    # (BN subtracts the batch mean; variance is shift-invariant) -> drop it.
    del conv_b
    N, Cin, D, H, W = x_ncdhw.shape
    Cout = conv_w.shape[0]
    S = D * H * W
    S_pad = _round_up(S, 128)            # lane-dense spatial axis
    K = 27 * Cin
    K_pad = _round_up(K, 16)             # bf16 sublane packing for the contraction
    C_mm = _round_up(Cout, 16)           # bf16-tile-aligned channel rows

    vmem_limit = _vmem_limit_bytes()
    out_dtype = x_ncdhw.dtype

    # --- wrapper-side im2col (plain XLA), channel-first so the kernel needs no
    #     transpose/relayout.  patches[n, tap*Cin + c, s] = x_pad[n, c, d+kd, ...]
    xb = x_ncdhw.astype(jnp.bfloat16)
    x_halo = jnp.pad(xb, ((0, 0), (0, 0), (1, 1), (1, 1), (1, 1)))
    taps = [x_halo[:, :, kd:kd + D, kh:kh + H, kw:kw + W]
            for kd in range(3) for kh in range(3) for kw in range(3)]
    patches = jnp.concatenate(taps, axis=1).reshape(N, K, S)
    patches = jnp.pad(patches, ((0, 0), (0, K_pad - K), (0, S_pad - S)))

    # Weight as (C_mm, K_pad): row = out channel, col ordering (kd, kh, kw, cin).
    w = jnp.transpose(conv_w, (0, 2, 3, 4, 1)).reshape(Cout, K)
    w = jnp.pad(w, ((0, C_mm - Cout), (0, K_pad - K))).astype(jnp.bfloat16)

    # --- pass 1: conv matmul + fused partial BN statistics --------------------
    col_bytes1 = 4 * K_pad + 8 * C_mm          # dbl-buffered patches + y + acc
    TM1 = _pick_lane_tile(S_pad, col_bytes1, vmem_limit // 2, max_lane_tile)
    n_t1 = S_pad // TM1

    y, psum, psq = pl.pallas_call(
        _conv_stats_kernel,
        out_shape=(
            jax.ShapeDtypeStruct((N, C_mm, S_pad), jnp.bfloat16),
            jax.ShapeDtypeStruct((N, n_t1, C_mm, 1), jnp.float32),
            jax.ShapeDtypeStruct((N, n_t1, C_mm, 1), jnp.float32),
        ),
        grid=(N, n_t1),
        in_specs=[
            pl.BlockSpec((C_mm, K_pad), lambda n, t: (0, 0)),
            pl.BlockSpec((None, K_pad, TM1), lambda n, t: (n, 0, t)),
        ],
        out_specs=(
            pl.BlockSpec((None, C_mm, TM1), lambda n, t: (n, 0, t)),
            pl.BlockSpec((None, None, C_mm, 1), lambda n, t: (n, t, 0, 0)),
            pl.BlockSpec((None, None, C_mm, 1), lambda n, t: (n, t, 0, 0)),
        ),
        compiler_params=pltpu.CompilerParams(
            dimension_semantics=("parallel", "parallel"),  # megacore / v7x 2-TC
            vmem_limit_bytes=vmem_limit),
    )(w, patches)

    # --- tiny XLA reduction of the fused partial statistics -------------------
    count = float(N * S)                 # true voxel count (padded columns are 0)
    mean = jnp.sum(psum, axis=(0, 1))[:, 0] / count              # (C_mm,)
    ex2 = jnp.sum(psq, axis=(0, 1))[:, 0] / count
    var = jnp.maximum(ex2 - mean * mean, 0.0)
    inv = jax.lax.rsqrt(var + eps)
    gamma = jnp.pad(bn_gamma.astype(jnp.float32), (0, C_mm - Cout))
    beta = jnp.pad(bn_beta.astype(jnp.float32), (0, C_mm - Cout))
    scale = (gamma * inv).reshape(C_mm, 1)
    shift = (beta - mean * gamma * inv).reshape(C_mm, 1)

    # --- pass 2: normalize + ReLU, emits the final NCDHW output ---------------
    col_bytes2 = 4 * C_mm + 2 * Cout * jnp.dtype(out_dtype).itemsize
    TM2 = _pick_lane_tile(S_pad, col_bytes2, vmem_limit // 2, max_lane_tile)
    n_t2 = S_pad // TM2

    out_flat = pl.pallas_call(
        _bn_relu_kernel,
        out_shape=jax.ShapeDtypeStruct((N, Cout, S_pad), out_dtype),
        grid=(N, n_t2),
        in_specs=[
            pl.BlockSpec((None, C_mm, TM2), lambda n, t: (n, 0, t)),
            pl.BlockSpec((C_mm, 1), lambda n, t: (0, 0)),
            pl.BlockSpec((C_mm, 1), lambda n, t: (0, 0)),
        ],
        out_specs=pl.BlockSpec((None, Cout, TM2), lambda n, t: (n, 0, t)),
        compiler_params=pltpu.CompilerParams(
            dimension_semantics=("parallel", "parallel"),
            vmem_limit_bytes=vmem_limit),
    )(y, scale, shift)

    out = out_flat[:, :, :S] if S_pad != S else out_flat
    return out.reshape(N, Cout, D, H, W)


# Pure-JAX f32 reference (same math, XLA conv) for verification.
def _reference(x, w, b, gamma, beta, eps=1e-5):
    y = jax.lax.conv_general_dilated(
        x.astype(jnp.float32), w.astype(jnp.float32),
        window_strides=(1, 1, 1), padding=[(1, 1)] * 3,
        dimension_numbers=("NCDHW", "OIDHW", "NCDHW"))
    y = y + b.reshape(1, -1, 1, 1, 1)
    mean = jnp.mean(y, axis=(0, 2, 3, 4), keepdims=True)
    var = jnp.mean((y - mean) ** 2, axis=(0, 2, 3, 4), keepdims=True)
    yhat = (y - mean) * jax.lax.rsqrt(var + eps)
    yhat = yhat * gamma.reshape(1, -1, 1, 1, 1) + beta.reshape(1, -1, 1, 1, 1)
    return jnp.maximum(yhat, 0.0)


if __name__ == "__main__":
    key = jax.random.PRNGKey(0)

    # Case 1: N=2, Cin=4, Cout=8, 8^3 voxels.  max_lane_tile=256 -> grid (2, 2)
    # per pass, exercising multi-tile indexing and the cross-tile BN reduction.
    N, Cin, Cout, D, H, W = 2, 4, 8, 8, 8, 8
    k1, k2, k3, k4, k5, key = jax.random.split(key, 6)
    x = jax.random.normal(k1, (N, Cin, D, H, W), dtype=jnp.float32)
    conv_w = jax.random.normal(k2, (Cout, Cin, 3, 3, 3), dtype=jnp.float32) * 0.1
    conv_b = jax.random.normal(k3, (Cout,), dtype=jnp.float32) * 0.1
    gamma = 1.0 + 0.1 * jax.random.normal(k4, (Cout,), dtype=jnp.float32)
    beta = 0.1 * jax.random.normal(k5, (Cout,), dtype=jnp.float32)

    out = jax.block_until_ready(
        lu_conv_forward(x, conv_w, conv_b, gamma, beta, max_lane_tile=256))
    ref = jax.block_until_ready(_reference(x, conv_w, conv_b, gamma, beta))
    assert out.shape == (N, Cout, D, H, W), out.shape
    # bf16 MXU operands / bf16 y (f32 accumulation) vs a pure-f32 reference.
    assert jnp.allclose(out, ref, atol=2e-2, rtol=2e-2), float(
        jnp.max(jnp.abs(out - ref)))

    # Case 2: odd spatial extent (S=210 -> padded to 256) and Cin=3 (K=81 -> 96).
    N2, Cin2, Cout2, D2, H2, W2 = 1, 3, 8, 5, 6, 7
    k1, k2, k3, k4, k5, key = jax.random.split(key, 6)
    x2 = jax.random.normal(k1, (N2, Cin2, D2, H2, W2), dtype=jnp.float32)
    w2 = jax.random.normal(k2, (Cout2, Cin2, 3, 3, 3), dtype=jnp.float32) * 0.1
    b2 = jax.random.normal(k3, (Cout2,), dtype=jnp.float32) * 0.1
    g2 = 1.0 + 0.1 * jax.random.normal(k4, (Cout2,), dtype=jnp.float32)
    bt2 = 0.1 * jax.random.normal(k5, (Cout2,), dtype=jnp.float32)

    out2 = jax.block_until_ready(lu_conv_forward(x2, w2, b2, g2, bt2))
    ref2 = jax.block_until_ready(_reference(x2, w2, b2, g2, bt2))
    assert out2.shape == (N2, Cout2, D2, H2, W2), out2.shape
    assert jnp.allclose(out2, ref2, atol=2e-2, rtol=2e-2), float(
        jnp.max(jnp.abs(out2 - ref2)))

    print("KERNEL_OK")
</pallas_src>

<mosaic_0001>
module attributes {stable_mosaic.version = 11 : i64} {
  func.func @_conv_stats_kernel(%arg0: i32, %arg1: i32, %arg2: memref<16x112xbf16, #tpu.memory_space<vmem>>, %arg3: memref<1x112x256xbf16, #tpu.memory_space<vmem>>, %arg4: memref<1x16x256xbf16, #tpu.memory_space<vmem>>, %arg5: memref<1x1x16x1xf32, #tpu.memory_space<vmem>>, %arg6: memref<1x1x16x1xf32, #tpu.memory_space<vmem>>) attributes {dimension_semantics = [#tpu.dimension_semantics<parallel>, #tpu.dimension_semantics<parallel>], iteration_bounds = array<i64: 2, 2>, scalar_prefetch = 0 : i64, scratch_operands = 0 : i64, tpu.core_type = #tpu.core_type<tc>, window_params = [{pipeline_mode = #tpu.pipeline_mode<synchronous>, transform_indices = @transform_0, window_bounds = array<i64: 16, 112>}, {transform_indices = @transform_1, window_bounds = array<i64: 1, 112, 256>}, {transform_indices = @transform_2, window_bounds = array<i64: 1, 16, 256>}, {transform_indices = @transform_3, window_bounds = array<i64: 1, 1, 16, 1>}, {transform_indices = @transform_4, window_bounds = array<i64: 1, 1, 16, 1>}]} {
    %c0 = arith.constant 0 : index
    %c0_0 = arith.constant 0 : index
    %0 = vector.load %arg2[%c0, %c0_0] : memref<16x112xbf16, #tpu.memory_space<vmem>>, vector<16x112xbf16>
    %c0_1 = arith.constant 0 : index
    %c0_2 = arith.constant 0 : index
    %c0_3 = arith.constant 0 : index
    %1 = vector.load %arg3[%c0_1, %c0_2, %c0_3] : memref<1x112x256xbf16, #tpu.memory_space<vmem>>, vector<1x112x256xbf16>
    %2 = vector.shape_cast %1 : vector<1x112x256xbf16> to vector<112x256xbf16>
    %cst = arith.constant dense<0.000000e+00> : vector<16x256xf32>
    %3 = tpu.matmul %0, %2, %cst {dimension_numbers = #tpu.dot_dimension_numbers<[1], [0], [0], [1], [0, 0, 1, 1], [], []>} : vector<16x112xbf16>, vector<112x256xbf16>, vector<16x256xf32> -> vector<16x256xf32>
    %4 = arith.truncf %3 : vector<16x256xf32> to vector<16x256xbf16>
    %c0_4 = arith.constant 0 : index
    %c0_5 = arith.constant 0 : index
    %c0_6 = arith.constant 0 : index
    %5 = vector.load %arg4[%c0_4, %c0_5, %c0_6] : memref<1x16x256xbf16, #tpu.memory_space<vmem>>, vector<1x16x256xbf16>
    %6 = vector.shape_cast %5 : vector<1x16x256xbf16> to vector<16x256xbf16>
    %7 = vector.shape_cast %4 : vector<16x256xbf16> to vector<1x16x256xbf16>
    tpu.vector_store %arg4[%c0_4, %c0_5, %c0_6], %7 {strides = array<i32>} : memref<1x16x256xbf16, #tpu.memory_space<vmem>>, vector<1x16x256xbf16>,
    %cst_7 = arith.constant dense<0.000000e+00> : vector<16xf32>
    %8 = vector.multi_reduction <add>, %3, %cst_7 [1] : vector<16x256xf32> to vector<16xf32>
    %9 = vector.shape_cast %8 : vector<16xf32> to vector<16x1xf32>
    %c0_8 = arith.constant 0 : index
    %c0_9 = arith.constant 0 : index
    %c0_10 = arith.constant 0 : index
    %c0_11 = arith.constant 0 : index
    %10 = vector.load %arg5[%c0_8, %c0_9, %c0_10, %c0_11] : memref<1x1x16x1xf32, #tpu.memory_space<vmem>>, vector<1x1x16x1xf32>
    %11 = vector.shape_cast %10 : vector<1x1x16x1xf32> to vector<16x1xf32>
    %12 = vector.shape_cast %9 : vector<16x1xf32> to vector<1x1x16x1xf32>
    tpu.vector_store %arg5[%c0_8, %c0_9, %c0_10, %c0_11], %12 {strides = array<i32>} : memref<1x1x16x1xf32, #tpu.memory_space<vmem>>, vector<1x1x16x1xf32>,
    %13 = arith.mulf %3, %3 : vector<16x256xf32>
    %cst_12 = arith.constant dense<0.000000e+00> : vector<16xf32>
    %14 = vector.multi_reduction <add>, %13, %cst_12 [1] : vector<16x256xf32> to vector<16xf32>
    %15 = vector.shape_cast %14 : vector<16xf32> to vector<16x1xf32>
    %c0_13 = arith.constant 0 : index
    %c0_14 = arith.constant 0 : index
    %c0_15 = arith.constant 0 : index
    %c0_16 = arith.constant 0 : index
    %16 = vector.load %arg6[%c0_13, %c0_14, %c0_15, %c0_16] : memref<1x1x16x1xf32, #tpu.memory_space<vmem>>, vector<1x1x16x1xf32>
    %17 = vector.shape_cast %16 : vector<1x1x16x1xf32> to vector<16x1xf32>
    %18 = vector.shape_cast %15 : vector<16x1xf32> to vector<1x1x16x1xf32>
    tpu.vector_store %arg6[%c0_13, %c0_14, %c0_15, %c0_16], %18 {strides = array<i32>} : memref<1x1x16x1xf32, #tpu.memory_space<vmem>>, vector<1x1x16x1xf32>,
    return
  }
  func.func @transform_0(%arg0: i32, %arg1: i32) -> (i32, i32) {
    %c0_i32 = arith.constant 0 : i32
    %c0_i32_0 = arith.constant 0 : i32
    %c0_i32_1 = arith.constant 0 : i32
    return %c0_i32, %c0_i32_0 : i32, i32
  }
  func.func @transform_1(%arg0: i32, %arg1: i32) -> (i32, i32, i32) {
    %c0_i32 = arith.constant 0 : i32
    %c0_i32_0 = arith.constant 0 : i32
    return %arg0, %c0_i32, %arg1 : i32, i32, i32
  }
  func.func @transform_2(%arg0: i32, %arg1: i32) -> (i32, i32, i32) {
    %c0_i32 = arith.constant 0 : i32
    %c0_i32_0 = arith.constant 0 : i32
    return %arg0, %c0_i32, %arg1 : i32, i32, i32
  }
  func.func @transform_3(%arg0: i32, %arg1: i32) -> (i32, i32, i32, i32) {
    %c0_i32 = arith.constant 0 : i32
    %c0_i32_0 = arith.constant 0 : i32
    %c0_i32_1 = arith.constant 0 : i32
    return %arg0, %arg1, %c0_i32, %c0_i32_0 : i32, i32, i32, i32
  }
  func.func @transform_4(%arg0: i32, %arg1: i32) -> (i32, i32, i32, i32) {
    %c0_i32 = arith.constant 0 : i32
    %c0_i32_0 = arith.constant 0 : i32
    %c0_i32_1 = arith.constant 0 : i32
    return %arg0, %arg1, %c0_i32, %c0_i32_0 : i32, i32, i32, i32
  }
}

</mosaic_0001>

<bundles_post_ra>
// kernel: tpu_custom_call.1
= control target key start
LH: loop header
LB: loop body
LE: loop exit
PB: predicated region body
PF: predicated region fallthrough
CT: control target
= control target key end

     0   :  { %s1262_s0 = inlined_call_operand.hbm [shape: bf16[16,112], index: 0, kind: input, shape index: {}]   ;;  %s1263_s1 = inlined_call_operand.hbm [shape: bf16[2,112,512], index: 1, kind: input, shape index: {}]   ;;  %s1264_s2 = inlined_call_operand.hbm [shape: bf16[2,16,512], index: 2, kind: output, shape index: {0}]   ;;  %s1265_s3 = inlined_call_operand.vmem [shape: f32[2,2,16,1], index: 3, kind: output, shape index: {1}]   ;;  %s1266_s4 = inlined_call_operand.vmem [shape: f32[2,2,16,1], index: 4, kind: output, shape index: {2}]  }
   0x1   :  { %1276 = sst [smem:[#allocation16_spill]] %s1262_s0 }
   0x2   :  { %1277 = sst [smem:[#allocation17_spill]] %s1265_s3 }
   0x3   :  { %1278 = sst [smem:[#allocation18_spill]] %s1266_s4 }
   0x4   :  { %10 = vsyncpa [#allocation3], 0 }
   0x5   :  { %11 = vsyncpa [#allocation6], 0 }
   0x6   :  { %13 = vsyncpa [#allocation6 + $0x1], 0 }
   0x7   :  { %14 = vsyncpa [#allocation4], 0 }
   0x8   :  { %16 = vsyncpa [#allocation4 + $0x1], 0  ;;  %s1052_s15 = smov 0   ;;  %s1054_s16 = smov 0  }
   0x9   :  { %s1056_s17 = smov 0   ;;  %s1058_s18 = smov 0  }
   0xa   :  { %s1060_s19 = smov 0   ;;  %s1062_s20 = smov 0  }
   0xb   :  { %s1064_s21 = smov 0   ;;  %s1066_s22 = smov 0  }
   0xc LB: > { %1279 = sst [smem:[#allocation11_spill]] %s985_s15  ;;  %s694_s23 = sadd.s32 4294967295, %s1013_s22   ;;  %s1013_s22 = sphi %s1066_s22, %s22_s22   ;;  %s1009_s21 = sphi %s1064_s21, %s1310_s21   ;;  %s1005_s20 = sphi %s1062_s20, %s1309_s20   ;;  %s1001_s19 = sphi %s1060_s19, %s1308_s19   ;;  %s997_s18 = sphi %s1058_s18, %s1303_s18   ;;  %s993_s17 = sphi %s1056_s17, %s1307_s17   ;;  %s989_s16 = sphi %s1054_s16, %s1306_s16   ;;  %s985_s15 = sphi %s1052_s15, %s1305_s15  }
   0xd   : > { %1280 = sst [smem:[#allocation12_spill]] %s1005_s20  ;;  %s695_s24 = sadd.s32 4294967294, %s1013_s22  }
   0xe   : > { %1281 = sst [smem:[#allocation13_spill]] %s1013_s22  ;;  %p71_p0 = scmp.ne.s32.totalorder %s993_s17, %s989_s16 }
   0xf   : > { %p72_p1 = scmp.eq.s32.totalorder %s1013_s22, 0  ;;  %p77_p2 = scmp.ne.s32.totalorder %s989_s16, %s985_s15 }
  0x10   : > { %p1100_p3 = scmp.eq.s32.totalorder %s694_s23, 0  ;;  %p103_p4 = scmp.eq.s32.totalorder %s694_s23, 3 }
  0x11   : > { %p1104_p5 = por %p72_p1, %p71_p0  ;;  %p109_p6 = scmp.eq.s32.totalorder %s695_s24, 3 }
  0x12   : > { %p1110_p7 = por %p1100_p3, %p77_p2  ;;  %p1114_p8 = por %p103_p4, %p71_p0 }
  0x13   : > { %p1118_p9 = por %p109_p6, %p77_p2  ;;  %p696_p10 = scmp.ge.s32.totalorder %s1013_s22, 1 }
  0x14   : > { %s1284_s28 = scalar_select %p1110_p7, 1, 0 }
  0x15   : > { %s1285_s29 = scalar_select %p1114_p8, 1, 0 }
  0x16   : > { %s1286_s30 = scalar_select %p1118_p9, 1, 0 }
  0x17   : > { %p172_p11 = scmp.lt.s32.totalorder %s1013_s22, 5  ;;  %s1015_s6 = smov [#allocation2]  }
  0x18   : > { %1287 = sst [smem:[#allocation14_spill]] %s1286_s30  ;;  %s184_s7 = sshll.u32 %s1015_s6, 4  ;;  %s185_s7 = int_to_ptr.vmem [resolvable:$true] %s184_s7 }
  0x19   : > { %p1124_p12 = pnand %p696_p10, %p172_p11  ;;  %p760_p0 = scmp.lt.s32.totalorder %s1013_s22, 4 }
  0x1a   : > { %s870_s10 = scalar_lea.vmem %s185_s7, 128  ;;  %p878_p9 = scmp.lt.s32.totalorder %s185_s7, %s185_s7 }
  0x1b   : > { %s1288_s5 = scalar_select %p1124_p12, 1, 0 }
  0x1c   : > { %p747_p13 = pneg %p1124_p12  ;;  %p1139_p2 = pnand %p760_p0, %p1104_p5 }
  0x1d   : > { %p871_p6 = scmp.ne.s32.totalorder %s185_s7, %s870_s10  ;;  %p879_p8 = scmp.lt.s32.totalorder %s870_s10, %s870_s10 }
  0x1e   : > { %p1133_p1 = pnand %p747_p13, %p1100_p3 }
  0x1f   : > { %p880_p7 = por %p879_p8, %p878_p9 }
  0x20   : > { %p861_p4 = pneg %p1133_p1 }
  0x22   : > { %p873_p10 = pnand %p871_p6, %p861_p4 }
  0x24   : > { %p874_p11 = pneg %p873_p10 }
  0x26   : > { %p881_p12 = pnand %p880_p7, %p874_p11 }
  0x28   : > { %884 = shalt.err (!%p881_p12)
}
  0x29   : > { %s1016_s11 = smov 64   ;;  %s1017_s12 = smov 4  }
  0x2a   : > { %s1291_s0 = sld [smem:[#allocation16_spill]]  ;;  %s31_s23 = sadd.s32 1, %s1005_s20 }
  0x2b   : > { %p32_p5 = scmp.ge.s32.totalorder %s31_s23, 2  ;;  %s34_s24 = sadd.s32 1, %s1009_s21 }
  0x2c   : > { %s198_s27 = sand.u32 1, %s993_s17   ;;  %s699_s6 = sshll.u32 %s1005_s20, 1 }
  0x2d   : > { %s1312_s23 = smov (%p32_p5, %s31_s23), 0  ;;  %s1314_s24 = smov (!%p32_p5, %s34_s24), %s1009_s21 }
  0x2e   : > { %1292 = sst [smem:[#allocation15_spill]] %s1312_s23  ;;  %s60_s10 = ssub.s32 %s1005_s20, %s1312_s23 }
  0x2f   : > { %p36_p7 = scmp.ge.s32.totalorder %s1314_s24, 2  ;;  %s736_s25 = smul.u32 112, %s198_s27 }
  0x30   : > { %750 = dma.hbm_to_vmem [thread:$0]  (!%p1133_p1), %s1291_s0, 128, %s185_s7, [#allocation3], %s1016_s11, %s1016_s11, %s1017_s12  }
  0x31   : > { %s737_s8 = smul.u32 56, %s1009_s21  ;;  %s1316_s24 = smov (%p36_p7, %s1314_s24), 0 }
  0x32   : > { %s59_s11 = ssub.s32 %s1009_s21, %s1316_s24  ;;  %s202_s15 = scalar_lea.vmem [#allocation5], %s736_s25 }
  0x33   : > { %s208_s7 = sadd.s32 %s737_s8, %s699_s6  ;;  %s61_s13 = sor.u32 %s60_s10, %s59_s11 }
  0x34   : > { %s700_s12 = sshll.u32 %s208_s7, 6  ;;  %p62_p8 = scmp.eq.s32.totalorder %s61_s13, 0 }
  0x35   : > { %s210_s30 = scalar_lea.hbm %s1263_s1, %s700_s12  ;;  %s211_s22 = sshll.u32 %s202_s15, 4  ;;  %s212_s22 = int_to_ptr.vmem [resolvable:$true] %s211_s22 }
  0x36   : > { %s1293_s23 = sadd.s32 1, %s993_s17  ;;  %s199_s4 = scalar_lea.sflag [#allocation6], %s198_s27 }
  0x37   : > { %s1170_s20 = scalar_select %p62_p8, %s993_s17, %s1293_s23  }
  0x38   : > { %p887_p9 = pneg %p1139_p2  ;;  %s898_s3 = scalar_lea.vmem %s212_s22, 1792 }
  0x39   : > { %p899_p12 = scmp.ne.s32.totalorder %s212_s22, %s898_s3  ;;  %s1018_s6 = smov [#allocation5]  }
  0x3a   : > { %s903_s10 = sshll.u32 %s1018_s6, 4  ;;  %s904_s10 = int_to_ptr.vmem [resolvable:$false] %s903_s10 }
  0x3b   : > { %p901_p13 = pnand %p899_p12, %p887_p9  ;;  %s905_s8 = scalar_lea.vmem %s904_s10, 3584 }
  0x3c   : > { %p906_p1 = scmp.lt.s32.totalorder %s212_s22, %s904_s10  ;;  %p907_p4 = scmp.lt.s32.totalorder %s905_s8, %s898_s3 }
  0x3d   : > { %p902_p0 = pneg %p901_p13 }
  0x3e   : > { %p908_p6 = por %p907_p4, %p906_p1 }
  0x40   : > { %p909_p10 = pnand %p908_p6, %p902_p0 }
  0x42   : > { %912 = shalt.err (!%p909_p10)
}
  0x43   : > { %s1019_s0 = smov 256   ;;  %s1020_s15 = smov 128  }
  0x44   : > { %s1021_s25 = smov 8   ;;  %p1294_p11 = scmp.ne.s32.totalorder %s1288_s5, 0 }
  0x45   : > { %754 = dma.hbm_to_vmem [thread:$0]  (!%p1139_p2), %s210_s30, 1792, %s212_s22, %s199_s4, %s1019_s0, %s1020_s15, %s1021_s25  }
  0x46   : > { %223 = sbr.rel (%p1294_p11) target bundleno = 452 (0x1c4), region = 28 }
  0x4b   : > { %972 = dma.done.wait (%p1100_p3), [#allocation3], 128  }
  0x4c   : > { %974 = vsyncadd (%p1100_p3), [#allocation3], 4294967168  ;;  %s1183_s3 = sand.u32 1, %s989_s16   ;;  %p1295_p5 = scmp.ne.s32.totalorder %s1284_s28, 0 }
  0x4d   : > { %s738_s23 = smul.u32 112, %s1183_s3  ;;  %s230_s27 = scalar_lea.sflag [#allocation6], %s1183_s3 }
  0x4f   : > { %s233_s7 = scalar_lea.vmem [#allocation5], %s738_s23 }
  0x50   : > { %976 = dma.done.wait (%p1295_p5), %s230_s27, 1792  }
  0x51   : > { %978 = vsyncadd (%p1295_p5), %s230_s27, 4294965504  ;;  %v1022_v0 = vmov 0   ;;  %v837_v1 = vld [vmem:[%s233_s7 + $0x64] ss:$8 sps:$4 sm:$0xff]   ;;  %v839_v2 = vld [vmem:[%s233_s7 + $0x60] ss:$8 sps:$4 sm:$0xff]  }
  0x52   : > { %424 = vmatprep.mubr.bf16.mxu0 %v1022_v0  ;;  %394 = vmatprep.subr.bf16.mxu0 %v837_v1  ;;  %v840_v3 = vld [vmem:[%s233_s7 + $0x54] ss:$8 sps:$4 sm:$0xff]   ;;  %v842_v4 = vld [vmem:[%s233_s7 + $0x50] ss:$8 sps:$4 sm:$0xff]   ;;  %v843_v5 = vld [vmem:[%s233_s7 + $0x44] ss:$8 sps:$4 sm:$0xff]  }
  0x53   : > { %395 = vmatpush1.bf16.msra.mxu0 %v839_v2  ;;  %v845_v6 = vld [vmem:[%s233_s7 + $0x40] ss:$8 sps:$4 sm:$0xff]   ;;  %v846_v7 = vld [vmem:[%s233_s7 + $0x34] ss:$8 sps:$4 sm:$0xff]   ;;  %v848_v8 = vld [vmem:[%s233_s7 + $0x30] ss:$8 sps:$4 sm:$0xff]  }
  0x54   : > { %396 = vmatprep.subr.bf16.mxu0 %v840_v3  ;;  %v849_v9 = vld [vmem:[%s233_s7 + $0x24] ss:$8 sps:$4 sm:$0xff]   ;;  %v851_v10 = vld [vmem:[%s233_s7 + $0x20] ss:$8 sps:$4 sm:$0xff]   ;;  %v852_v11 = vld [vmem:[%s233_s7 + $0x14] ss:$8 sps:$4 sm:$0xff]  }
  0x55   : > { %v854_v12 = vld [vmem:[%s233_s7 + $0x10] ss:$8 sps:$4 sm:$0xff]   ;;  %v855_v13 = vld [vmem:[%s233_s7 + $0x4] ss:$8 sps:$4 sm:$0xff]   ;;  %v857_v14 = vld [vmem:[%s233_s7] ss:$8 sps:$4 sm:$0xff]  }
  0x56   : > { %v858_v15 = vld [vmem:[#allocation2] sm:$0xff]   ;;  %vm388_vm0 = vcmask 916480   ;;  %s703_s4 = sshll.u32 %s1183_s3, 4  ;;  %s729_s28 = sshll.u32 %s997_s18, 1 }
  0x57   : > { %397 = vmatpush1.bf16.msra.mxu0 %v842_v4  ;;  %s253_s22 = scalar_lea.vmem [#allocation7], %s703_s4  ;;  %s730_s30 = sshll.u32 %s1001_s19, 3 }
  0x58   : > { %398 = vmatprep.subr.bf16.mxu0 %v843_v5  ;;  %s504_s26 = sshll.u32 %s253_s22, 4  ;;  %s501_s5 = sadd.s32 %s730_s30, %s729_s28  ;;  %s1194_s26 = int_to_ptr.vmem [resolvable:$true] %s504_s26 }
  0x59   : > { %s731_s9 = sshll.u32 %s501_s5, 6  ;;  %s471_s14 = scalar_lea.sflag [#allocation4], %s1183_s3 }
  0x5a   : > { %s1199_s13 = scalar_lea.hbm %s1264_s2, %s731_s9  ;;  %s913_s6 = scalar_lea.vmem %s1194_s26, 256 }
  0x5b   : > { %399 = vmatpush1.bf16.msra.mxu0 %v845_v6  ;;  %p914_p3 = scmp.ne.s32.totalorder %s1194_s26, %s913_s6  ;;  %p1296_p2 = scmp.ne.s32.totalorder %s1285_s29, 0 }
  0x5c   : > { %400 = vmatprep.subr.bf16.mxu0 %v846_v7  ;;  %s1023_s10 = smov [#allocation7]  }
  0x5d   : > { %p915_p7 = pnand %p914_p3, %p1296_p2  ;;  %s917_s8 = sshll.u32 %s1023_s10, 4  ;;  %s918_s8 = int_to_ptr.vmem [resolvable:$false] %s917_s8 }
  0x5e   : > { %s919_s0 = scalar_lea.vmem %s918_s8, 512  ;;  %p920_p9 = scmp.lt.s32.totalorder %s1194_s26, %s918_s8 }
  0x5f   : > { %401 = vmatpush1.bf16.msra.mxu0 %v848_v8  ;;  %p916_p8 = pneg %p915_p7  ;;  %p921_p12 = scmp.lt.s32.totalorder %s919_s0, %s913_s6 }
  0x60   : > { %402 = vmatprep.subr.bf16.mxu0 %v849_v9 }
  0x61   : > { %p922_p13 = por %p921_p12, %p920_p9 }
  0x63   : > { %403 = vmatpush1.bf16.msra.mxu0 %v851_v10  ;;  %p923_p0 = pnand %p922_p13, %p916_p8 }
  0x64   : > { %404 = vmatprep.subr.bf16.mxu0 %v852_v11 }
  0x67   : > { %405 = vmatpush1.bf16.msra.mxu0 %v854_v12 }
  0x68   : > { %406 = vmatprep.subr.bf16.mxu0 %v855_v13 }
  0x6b   : > { %407 = vmatpush1.bf16.msra.mxu0 %v857_v14 }
  0x6e   : > { %725 = vmatmul.mubr.msk.bf16.vlgmr.msra.gmra.mxu0 %vm388_vm0, %v858_v15 }
 0x12e   : > { %v426_v16 = vpop.f32.mrf.mxu0 }
 0x12f   : > { %v458_v20 = vmul.f32 %v426_v16, %v426_v16 }
 0x130   : > { %v428_v17 = vpop.f32.mrf.mxu0 }
 0x131   : > { %v734_v18 = vpack.c.bf16 %v428_v17, %v426_v16  ;;  %v449_v19 = vadd.f32 %v428_v17, %v426_v16  ;;  %v459_v21 = vmul.f32 %v428_v17, %v428_v17 }
 0x132   : > { %v430_v22 = vpop.f32.mrf.mxu0 }
 0x133   : > { %447 = vst [vmem:[%s253_s22] sm:$0xff] %v734_v18  ;;  %450 = vadd.xlane.f32.xlu0 %v449_v19  ;;  %v462_v23 = vadd.f32 %v459_v21, %v458_v20  ;;  %v460_v28 = vmul.f32 %v430_v22, %v430_v22 }
 0x134   : > { %v432_v24 = vpop.f32.mrf.mxu0 }
 0x135   : > { %v735_v25 = vpack.c.bf16 %v432_v24, %v430_v22  ;;  %v461_v26 = vmul.f32 %v432_v24, %v432_v24  ;;  %463 = vadd.xlane.f32.xlu1 %v462_v23  ;;  %v452_v27 = vadd.f32 %v432_v24, %v430_v22 }
 0x137   : > { %448 = vst [vmem:[%s253_s22 + $0x8] sm:$0xff] %v735_v25  ;;  %453 = vadd.xlane.f32.xlu0 %v452_v27  ;;  %v465_v29 = vadd.f32 %v461_v26, %v460_v28 }
 0x139   : > { %466 = vadd.xlane.f32.xlu1 %v465_v29 }
 0x13a   : > { %926 = shalt.err (!%p923_p0)
}
 0x13b   : > { %s927_s15 = scalar_lea.hbm %s1199_s13, 256  ;;  %s931_s27 = scalar_lea.hbm %s1264_s2, 1024 }
 0x13c   : > { %p928_p1 = scmp.ne.s32.totalorder %s1199_s13, %s927_s15  ;;  %p932_p10 = scmp.lt.s32.totalorder %s1199_s13, %s1264_s2 }
 0x13d   : > { %p933_p11 = scmp.lt.s32.totalorder %s931_s27, %s927_s15 }
 0x13e   : > { %p929_p4 = pnand %p928_p1, %p1296_p2 }
 0x13f   : > { %p934_p5 = por %p933_p11, %p932_p10 }
 0x140   : > { %p930_p6 = pneg %p929_p4 }
 0x142   : > { %p935_p3 = pnand %p934_p5, %p930_p6 }
 0x144   : > { %938 = shalt.err (!%p935_p3)
}
 0x145   : > { %s1024_s22 = smov 128   ;;  %s1025_s28 = smov 256   ;;  %vm455_vm1 = vcmask 7168  }
 0x146   : > { %s1026_s30 = smov 8   ;;  %p278_p7 = scmp.lt.s32.totalorder %s1001_s19, 1 }
 0x147   : > { %745 = dma.vmem_to_hbm [thread:$0]  (%p1296_p2), %s1194_s26, 256, %s1199_s13, %s471_s14, %s1024_s22, %s1025_s28, %s1026_s30  }
 0x148   : > { %p280_p8 = scmp.lt.s32.totalorder %s997_s18, 1  ;;  %s1318_s19 = smov (!%p278_p7, %s1001_s19), 1 }
 0x149   : > { %s705_s9 = sshll.u32 %s1318_s19, 2  ;;  %s1297_s8 = sld [smem:[#allocation17_spill]] }
 0x14a   : > { %s1320_s18 = smov (!%p280_p8, %s997_s18), 1  ;;  %s1298_s23 = sld [smem:[#allocation18_spill]] }
 0x14b   : > { %s704_s5 = sshll.u32 %s1320_s18, 1 }
 0x14c   : > { %s284_s11 = sadd.s32 %s705_s9, %s704_s5 }
 0x14d   : > { %s706_s12 = sshll.u32 %s284_s11, 3 }
 0x14f   : > { %s286_s0 = scalar_lea.vmem %s1297_s8, %s706_s12 }
 0x150   : > { %s295_s29 = scalar_lea.vmem %s1298_s23, %s706_s12 }
 0x1bc   : > { %v451_v30 = vpop.xlane.xlu0 %450 }
 0x1bd   : > { %456 = vst.msk [vmem:[%s286_s0] sm:$0xff] %vm455_vm1, %v451_v30 }
 0x1be   : > { %v464_v31 = vpop.xlane.xlu1 %463 }
 0x1bf   : > { %468 = vst.msk [vmem:[%s295_s29] sm:$0xff] %vm455_vm1, %v464_v31 }
 0x1c0   : > { %v454_v32 = vpop.xlane.xlu0 %453 }
 0x1c1   : > { %457 = vst.msk [vmem:[%s286_s0 + $0x8] sm:$0xff] %vm455_vm1, %v454_v32 }
 0x1c2   : > { %v467_v33 = vpop.xlane.xlu1 %466 }
 0x1c3   : > { %469 = vst.msk [vmem:[%s295_s29 + $0x8] sm:$0xff] %vm455_vm1, %v467_v33 }
 0x1c4 PF: > { %s1299_s18 = sld [smem:[#allocation13_spill]] }
 0x1c5   : > { %s1300_s19 = sld [smem:[#allocation11_spill]] }
 0x1c6   : > { %s1301_s3 = sld [smem:[#allocation14_spill]] }
 0x1ca   : > { %p762_p2 = scmp.ge.s32.totalorder %s1299_s18, 2 }
 0x1cb   : > { %s525_s26 = sand.u32 1, %s1300_s19  }
 0x1cc   : > { %p1302_p9 = scmp.ne.s32.totalorder %s1301_s3, 0  ;;  %s526_s13 = scalar_lea.sflag [#allocation4], %s525_s26 }
 0x1ce   : > { %p756_p12 = pnand %p762_p2, %p1302_p9 }
 0x1d0   : > { %p757_p13 = pneg %p756_p12 }
 0x1d2   : > { %980 = dma.done.wait (%p757_p13), %s526_s13, 256  }
 0x1d3   : > { %982 = vsyncadd (%p757_p13), %s526_s13, 4294967040  ;;  %s22_s22 = sadd.s32 1, %s1299_s18   ;;  %s1303_s18 = sld [smem:[#allocation12_spill]] }
 0x1d4   : > { %p19_p0 = scmp.ge.s32.totalorder %s22_s22, 6   ;;  %s1304_s14 = sld [smem:[#allocation15_spill]] }
 0x1d5   : > { %s1305_s15 = smov %s989_s16  ;;  %s1306_s16 = smov %s993_s17 }
 0x1d6   : > { %s1307_s17 = smov %s1170_s20  ;;  %s1308_s19 = smov %s1009_s21 }
 0x1d7   : > { %s1310_s21 = smov %s1316_s24  ;;  %21 = sbr.rel (!%p19_p0) target bundleno = 12 (0xc), region = 102 }
 0x1da   : > { %s1309_s20 = smov %s1304_s14 }
 0x1dc   :  { %555 = vsyncpa [#allocation3], 1 }
 0x1dd   :  { %557 = vsyncpa [#allocation3 + $0x1], 1 }
 0x1de   :  { %558 = vsyncpa [#allocation6], 1 }
 0x1df   :  { %560 = vsyncpa [#allocation6 + $0x1], 1 }
 0x1e0   :  { %561 = vsyncpa [#allocation4], 1 }
 0x1e1   :  { %563 = vsyncpa [#allocation4 + $0x1], 1 }

</bundles_post_ra>
